<compile_context>
chip_gen: v7x
topology: tpu7x:2x2x1
jax: 0.10.0
libtpu: 0.0.40
codegen_flags: <defaults>
</compile_context>

<pallas_src>
import functools

import jax
import jax.numpy as jnp
from jax.experimental import pallas as pl
from jax.experimental.pallas import tpu as pltpu


# --------------------------------------------------------------------------
# Phase 1: tiled global-average-pool + excitation MLP (once per batch tile)
# --------------------------------------------------------------------------
def _pool_gate_kernel(x_ref, w1t_ref, w2t_ref, g_ref, acc_ref, *, hw, hw_tile):
    # x_ref  : (B_TILE, C, HW_TILE)  current spatial tile of B_TILE batch rows
    # w1t_ref: (C, Ch)  f32, already includes the 1/HW mean scale
    # w2t_ref: (Ch, C)  f32
    # g_ref  : (B_TILE, C, 1) gates output (out dtype)
    # acc_ref: (B_TILE, C)    f32 scratch accumulator (persists across HW tiles)
    t = pl.program_id(1)
    num_t = pl.num_programs(1)

    @pl.when(t == 0)
    def _init():
        acc_ref[...] = jnp.zeros_like(acc_ref)

    def _accumulate(x):
        # Cross-lane reduce + f32 accumulate; hidden under the read DMA.
        acc_ref[...] += jnp.sum(x, axis=-1, dtype=jnp.float32)          # (B_TILE, C)

    if hw % hw_tile == 0:
        _accumulate(x_ref[...])
    else:
        # Ragged spatial size: the last HW tile extends past the array, and its
        # out-of-bounds lanes contain unspecified data -> mask them to zero.
        n_full = hw // hw_tile                       # python int
        tail = hw - n_full * hw_tile                 # python int, 0 < tail < hw_tile

        @pl.when(t < num_t - 1)
        def _full_tile():
            _accumulate(x_ref[...])

        @pl.when(t == num_t - 1)
        def _ragged_tile():
            x = x_ref[...]
            lane = jax.lax.broadcasted_iota(jnp.int32, x.shape, 2)
            _accumulate(jnp.where(lane < tail, x, jnp.zeros_like(x)))

    @pl.when(t == num_t - 1)
    def _finalize():
        # Excitation MLP, issued exactly once per batch tile (tiny vs DMA time).
        h = jnp.dot(acc_ref[...], w1t_ref[...],
                    preferred_element_type=jnp.float32)                 # (B_TILE, Ch)
        h = jnp.maximum(h, 0.0)
        g = jnp.dot(h, w2t_ref[...],
                    preferred_element_type=jnp.float32)                 # (B_TILE, C)
        # Cast once at (B_TILE, C) size; broadcast over HW happens in phase 2.
        g_ref[...] = jax.nn.sigmoid(g).astype(g_ref.dtype)[:, :, None]  # (B_TILE, C, 1)


# --------------------------------------------------------------------------
# Phase 2: write-only broadcast of the gates over the spatial axis
# --------------------------------------------------------------------------
def _broadcast_kernel(g_ref, o_ref):
    # g_ref: (B_TILE, C, 1) resident gates (already in output dtype)
    # o_ref: (B_TILE, C, HW_TILE) lane-dense output tile — pure vst/DMA work.
    # (Out-of-bounds lanes of a ragged last tile are discarded by Pallas.)
    o_ref[...] = jnp.broadcast_to(g_ref[...], o_ref.shape)


# --------------------------------------------------------------------------
# Tile selection
# --------------------------------------------------------------------------
def _pick_tiles(b, c, hw, itemsize, per_buffer_budget_bytes):
    """Choose (B_TILE, HW_TILE).

    HW_TILE: largest multiple of 128 (<= HW) whose single-row (1, C, HW_TILE)
    block fits the per-buffer budget; full extent if HW < 128.  Non-divisible
    HW is handled with a masked ragged tail, so we never fall back to a giant
    full-extent block (v7x VMEM guard).

    B_TILE: as many batch rows as fit the same budget (and divide B), so small
    feature maps move >= ~1 MiB per grid step and the MLP runs with M=B_TILE.
    """
    if hw < 128:
        hw_tile = hw                                   # full extent satisfies (8,128) rule
    else:
        max_lanes = max(128, (per_buffer_budget_bytes // (c * itemsize)) // 128 * 128)
        hw_tile = min((hw // 128) * 128, max_lanes)    # largest aligned tile <= HW

    block_bytes = max(1, c * hw_tile * itemsize)
    b_tile = max(1, min(b, per_buffer_budget_bytes // block_bytes))
    while b % b_tile != 0:                             # keep the batch axis un-ragged
        b_tile -= 1
    return b_tile, hw_tile


# --------------------------------------------------------------------------
# Wrapper
# --------------------------------------------------------------------------
def se_layer(x_nchw, w1, w2, *,
             per_buffer_budget_bytes=8 * 1024 * 1024,
             vmem_limit_bytes=32 * 1024 * 1024):
    """x_nchw: (B, C, H, W); w1: (C//r, C) [fc1.weight]; w2: (C, C//r) [fc2.weight]."""
    b, c, h, w = x_nchw.shape
    hw = h * w
    x3 = x_nchw.reshape(b, c, hw)                      # NCHW -> NC(HW)

    # pooled @ W1^T ; fold the 1/HW mean scale into W1^T (acc stays f32).
    w1t = (w1.T * (1.0 / hw)).astype(jnp.float32)      # (C, Ch)
    w2t = w2.T.astype(jnp.float32)                     # (Ch, C)
    ch = w1t.shape[1]

    itemsize = jnp.dtype(x_nchw.dtype).itemsize
    b_tile, hw_tile = _pick_tiles(b, c, hw, itemsize, per_buffer_budget_bytes)
    n_b = b // b_tile
    n_t = pl.cdiv(hw, hw_tile)

    # ---------------- phase 1: pool + MLP -> gates (B, C, 1) ----------------
    pool_kernel = functools.partial(_pool_gate_kernel, hw=hw, hw_tile=hw_tile)
    gates = pl.pallas_call(
        pool_kernel,
        out_shape=jax.ShapeDtypeStruct((b, c, 1), x_nchw.dtype),
        grid_spec=pltpu.PrefetchScalarGridSpec(
            num_scalar_prefetch=0,
            grid=(n_b, n_t),                            # HW reduction axis last
            in_specs=[
                pl.BlockSpec((b_tile, c, hw_tile), lambda bi, ti: (bi, 0, ti)),
                pl.BlockSpec((c, ch), lambda bi, ti: (0, 0)),   # resident weights
                pl.BlockSpec((ch, c), lambda bi, ti: (0, 0)),
            ],
            out_specs=pl.BlockSpec((b_tile, c, 1), lambda bi, ti: (bi, 0, 0)),
            scratch_shapes=[pltpu.VMEM((b_tile, c), jnp.float32)],
        ),
        compiler_params=pltpu.CompilerParams(
            dimension_semantics=("parallel", "arbitrary"),
            vmem_limit_bytes=vmem_limit_bytes,
        ),
    )(x3, w1t, w2t)

    # ------------- phase 2: input-free broadcast-write over HW --------------
    out3 = pl.pallas_call(
        _broadcast_kernel,
        out_shape=jax.ShapeDtypeStruct((b, c, hw), x_nchw.dtype),
        grid_spec=pltpu.PrefetchScalarGridSpec(
            num_scalar_prefetch=0,
            grid=(n_b, n_t),
            in_specs=[pl.BlockSpec((b_tile, c, 1), lambda bi, ti: (bi, 0, 0))],
            out_specs=pl.BlockSpec((b_tile, c, hw_tile), lambda bi, ti: (bi, 0, ti)),
        ),
        compiler_params=pltpu.CompilerParams(
            dimension_semantics=("parallel", "parallel"),
            vmem_limit_bytes=vmem_limit_bytes,
        ),
    )(gates)

    return out3.reshape(b, c, h, w)


# --------------------------------------------------------------------------
# Pure-JAX reference of the PyTorch forward
# --------------------------------------------------------------------------
def se_layer_ref(x_nchw, w1, w2):
    y = jnp.mean(x_nchw.astype(jnp.float32), axis=(2, 3))        # (B, C)
    y = jnp.maximum(y @ w1.astype(jnp.float32).T, 0.0)           # (B, C//r)
    y = jax.nn.sigmoid(y @ w2.astype(jnp.float32).T)             # (B, C)
    return jnp.broadcast_to(y[:, :, None, None], x_nchw.shape).astype(x_nchw.dtype)


if __name__ == "__main__":
    key = jax.random.PRNGKey(0)
    k_x, k_w1, k_w2, k_x2, k_w3, k_w4 = jax.random.split(key, 6)
    reduction = 16

    # Primary check: shapes consistent with the module (channel=64, reduction=16).
    B, C, H, W = 2, 64, 16, 16
    Ch = C // reduction
    x = jax.random.normal(k_x, (B, C, H, W), dtype=jnp.float32)
    # PyTorch Linear weight shapes: (out, in), no bias
    w1 = jax.random.normal(k_w1, (Ch, C), dtype=jnp.float32) * 0.1   # fc1.weight
    w2 = jax.random.normal(k_w2, (C, Ch), dtype=jnp.float32) * 0.1   # fc2.weight

    out = jax.block_until_ready(se_layer(x, w1, w2))
    ref = se_layer_ref(x, w1, w2)
    assert out.shape == x.shape
    assert jnp.allclose(out, ref, atol=1e-5, rtol=1e-5), "mismatch vs reference"

    # Secondary check: exercises batch-row blocking and the masked ragged HW
    # tail (H*W = 130 is not a multiple of 128).
    B2, C2, H2, W2 = 3, 32, 10, 13
    Ch2 = C2 // reduction
    x2 = jax.random.normal(k_x2, (B2, C2, H2, W2), dtype=jnp.float32)
    w3 = jax.random.normal(k_w3, (Ch2, C2), dtype=jnp.float32) * 0.1
    w4 = jax.random.normal(k_w4, (C2, Ch2), dtype=jnp.float32) * 0.1

    out2 = jax.block_until_ready(se_layer(x2, w3, w4))
    ref2 = se_layer_ref(x2, w3, w4)
    assert jnp.allclose(out2, ref2, atol=1e-5, rtol=1e-5), "ragged-tail mismatch"

    print("KERNEL_OK")
</pallas_src>

<mosaic_0001>
module attributes {stable_mosaic.version = 11 : i64} {
  func.func @_pool_gate_kernel(%arg0: i32, %arg1: i32, %arg2: memref<2x64x256xf32, #tpu.memory_space<vmem>>, %arg3: memref<64x4xf32, #tpu.memory_space<vmem>>, %arg4: memref<4x64xf32, #tpu.memory_space<vmem>>, %arg5: memref<2x64x1xf32, #tpu.memory_space<vmem>>, %arg6: memref<2x64xf32, #tpu.memory_space<vmem>>) attributes {dimension_semantics = [#tpu.dimension_semantics<parallel>, #tpu.dimension_semantics<arbitrary>], iteration_bounds = array<i64: 1, 1>, scalar_prefetch = 0 : i64, scratch_operands = 1 : i64, tpu.core_type = #tpu.core_type<tc>, window_params = [{transform_indices = @transform_0, window_bounds = array<i64: 2, 64, 256>}, {pipeline_mode = #tpu.pipeline_mode<synchronous>, transform_indices = @transform_1, window_bounds = array<i64: 64, 4>}, {pipeline_mode = #tpu.pipeline_mode<synchronous>, transform_indices = @transform_2, window_bounds = array<i64: 4, 64>}, {transform_indices = @transform_3, window_bounds = array<i64: 2, 64, 1>}]} {
    %c0_i32 = arith.constant 0 : i32
    %0 = arith.cmpi eq, %arg1, %c0_i32 : i32
    %1 = arith.extui %0 : i1 to i32
    %c0_i32_0 = arith.constant 0 : i32
    %2 = arith.cmpi ne, %1, %c0_i32_0 : i32
    scf.if %2 {
      %cst_9 = arith.constant 0.000000e+00 : f32
      %11 = vector.broadcast %cst_9 : f32 to vector<2x64xf32>
      %c0_10 = arith.constant 0 : index
      %c0_11 = arith.constant 0 : index
      %12 = vector.load %arg6[%c0_10, %c0_11] : memref<2x64xf32, #tpu.memory_space<vmem>>, vector<2x64xf32>
      tpu.vector_store %arg6[%c0_10, %c0_11], %11 {strides = array<i32>} : memref<2x64xf32, #tpu.memory_space<vmem>>, vector<2x64xf32>,
    } else {
    }
    %c0 = arith.constant 0 : index
    %c0_1 = arith.constant 0 : index
    %c0_2 = arith.constant 0 : index
    %3 = vector.load %arg2[%c0, %c0_1, %c0_2] : memref<2x64x256xf32, #tpu.memory_space<vmem>>, vector<2x64x256xf32>
    %c0_3 = arith.constant 0 : index
    %c0_4 = arith.constant 0 : index
    %4 = vector.load %arg6[%c0_3, %c0_4] : memref<2x64xf32, #tpu.memory_space<vmem>>, vector<2x64xf32>
    %cst = arith.constant dense<0.000000e+00> : vector<2x64xf32>
    %5 = vector.multi_reduction <add>, %3, %cst [2] : vector<2x64x256xf32> to vector<2x64xf32>
    %6 = arith.addf %4, %5 : vector<2x64xf32>
    %c0_5 = arith.constant 0 : index
    %c0_6 = arith.constant 0 : index
    %7 = vector.load %arg6[%c0_5, %c0_6] : memref<2x64xf32, #tpu.memory_space<vmem>>, vector<2x64xf32>
    tpu.vector_store %arg6[%c0_5, %c0_6], %6 {strides = array<i32>} : memref<2x64xf32, #tpu.memory_space<vmem>>, vector<2x64xf32>,
    %c0_i32_7 = arith.constant 0 : i32
    %8 = arith.cmpi eq, %arg1, %c0_i32_7 : i32
    %9 = arith.extui %8 : i1 to i32
    %c0_i32_8 = arith.constant 0 : i32
    %10 = arith.cmpi ne, %9, %c0_i32_8 : i32
    scf.if %10 {
      %c0_9 = arith.constant 0 : index
      %c0_10 = arith.constant 0 : index
      %11 = vector.load %arg6[%c0_9, %c0_10] : memref<2x64xf32, #tpu.memory_space<vmem>>, vector<2x64xf32>
      %c0_11 = arith.constant 0 : index
      %c0_12 = arith.constant 0 : index
      %12 = vector.load %arg3[%c0_11, %c0_12] : memref<64x4xf32, #tpu.memory_space<vmem>>, vector<64x4xf32>
      %cst_13 = arith.constant dense<0.000000e+00> : vector<2x4xf32>
      %13 = tpu.matmul %11, %12, %cst_13 {dimension_numbers = #tpu.dot_dimension_numbers<[1], [0], [0], [1], [0, 0, 1, 1], [], []>} : vector<2x64xf32>, vector<64x4xf32>, vector<2x4xf32> -> vector<2x4xf32>
      %cst_14 = arith.constant 0.000000e+00 : f32
      %14 = vector.broadcast %cst_14 : f32 to vector<2x4xf32>
      %15 = arith.maximumf %13, %14 : vector<2x4xf32>
      %c0_15 = arith.constant 0 : index
      %c0_16 = arith.constant 0 : index
      %16 = vector.load %arg4[%c0_15, %c0_16] : memref<4x64xf32, #tpu.memory_space<vmem>>, vector<4x64xf32>
      %cst_17 = arith.constant dense<0.000000e+00> : vector<2x64xf32>
      %17 = tpu.matmul %15, %16, %cst_17 {dimension_numbers = #tpu.dot_dimension_numbers<[1], [0], [0], [1], [0, 0, 1, 1], [], []>} : vector<2x4xf32>, vector<4x64xf32>, vector<2x64xf32> -> vector<2x64xf32>
      %18 = arith.negf %17 : vector<2x64xf32>
      %19 = math.exp %18 : vector<2x64xf32>
      %cst_18 = arith.constant 1.000000e+00 : f32
      %20 = vector.broadcast %cst_18 : f32 to vector<2x64xf32>
      %21 = arith.addf %20, %19 : vector<2x64xf32>
      %22 = arith.divf %20, %21 : vector<2x64xf32>
      %23 = vector.shape_cast %22 : vector<2x64xf32> to vector<2x64x1xf32>
      %c0_19 = arith.constant 0 : index
      %c0_20 = arith.constant 0 : index
      %c0_21 = arith.constant 0 : index
      %24 = vector.load %arg5[%c0_19, %c0_20, %c0_21] : memref<2x64x1xf32, #tpu.memory_space<vmem>>, vector<2x64x1xf32>
      tpu.vector_store %arg5[%c0_19, %c0_20, %c0_21], %23 {strides = array<i32>} : memref<2x64x1xf32, #tpu.memory_space<vmem>>, vector<2x64x1xf32>,
    } else {
    }
    return
  }
  func.func @transform_0(%arg0: i32, %arg1: i32) -> (i32, i32, i32) {
    %c0_i32 = arith.constant 0 : i32
    %c0_i32_0 = arith.constant 0 : i32
    return %arg0, %c0_i32, %arg1 : i32, i32, i32
  }
  func.func @transform_1(%arg0: i32, %arg1: i32) -> (i32, i32) {
    %c0_i32 = arith.constant 0 : i32
    %c0_i32_0 = arith.constant 0 : i32
    %c0_i32_1 = arith.constant 0 : i32
    return %c0_i32, %c0_i32_0 : i32, i32
  }
  func.func @transform_2(%arg0: i32, %arg1: i32) -> (i32, i32) {
    %c0_i32 = arith.constant 0 : i32
    %c0_i32_0 = arith.constant 0 : i32
    %c0_i32_1 = arith.constant 0 : i32
    return %c0_i32, %c0_i32_0 : i32, i32
  }
  func.func @transform_3(%arg0: i32, %arg1: i32) -> (i32, i32, i32) {
    %c0_i32 = arith.constant 0 : i32
    %c0_i32_0 = arith.constant 0 : i32
    %c0_i32_1 = arith.constant 0 : i32
    return %arg0, %c0_i32, %c0_i32_0 : i32, i32, i32
  }
}

</mosaic_0001>

<bundles_post_ra>
// kernel: tpu_custom_call.1
= control target key start
LH: loop header
LB: loop body
LE: loop exit
PB: predicated region body
PF: predicated region fallthrough
CT: control target
= control target key end

     0   :  { %8 = vsyncpa [#allocation4], 0  ;;  %s580_s12 = smov [#allocation3]   ;;  %s733_s0 = inlined_call_operand.hbm [shape: f32[2,64,256], index: 0, kind: input, shape index: {}]   ;;  %s734_s1 = inlined_call_operand.vmem [shape: f32[64,4], index: 1, kind: input, shape index: {}]   ;;  %s735_s2 = inlined_call_operand.vmem [shape: f32[4,64], index: 2, kind: input, shape index: {}]   ;;  %s736_s3 = inlined_call_operand.vmem [shape: f32[2,64,1], index: 3, kind: output, shape index: {}]  }
   0x1   :  { %s14_s13 = sshll.u32 %s580_s12, 4  ;;  %s556_s16 = scalar_lea.hbm %s733_s0, 4096  ;;  %s15_s13 = int_to_ptr.vmem [resolvable:$true] %s14_s13 }
   0x2   :  { %p557_p0 = scmp.ne.s32.totalorder %s733_s0, %s556_s16  ;;  %p560_p1 = scmp.lt.u32.totalorder %s556_s16, %s733_s0 }
   0x4   :  { %p562_p2 = pnand %p560_p1, %p557_p0 }
   0x6   :  { %565 = shalt.err (!%p562_p2)
}
   0x7   :  { %s566_s21 = scalar_lea.vmem %s15_s13, 4096  ;;  %p571_p4 = scmp.lt.s32.totalorder %s15_s13, %s15_s13 }
   0x8   :  { %p567_p3 = scmp.ne.s32.totalorder %s15_s13, %s566_s21  ;;  %p572_p5 = scmp.lt.s32.totalorder %s566_s21, %s566_s21 }
   0xa   :  { %p573_p6 = por %p572_p5, %p571_p4 }
   0xc   :  { %p574_p7 = pnand %p573_p6, %p567_p3 }
   0xe   :  { %577 = shalt.err (!%p574_p7)
}
   0xf   :  { %s581_s22 = smov 256   ;;  %s582_s23 = smov 16  }
  0x10   :  { %20 = dma.hbm_to_vmem [thread:$0]  %s733_s0, 4096, %s15_s13, [#allocation4], %s581_s22, %s581_s22, %s582_s23  }
  0x11   :  { %578 = dma.done.wait [#allocation4], 4096  }
  0x12   :  { %579 = vsyncadd [#allocation4], 4294963200  ;;  %v50_v0 = vld [vmem:[#allocation3 + $0x80] sm:$0xff]  ;;  %v51_v1 = vld [vmem:[#allocation3 + $0x88] sm:$0xff]  ;;  %vm32_vm0 = vcmask 517120   ;;  %v583_v50 = vmov 0.0  }
  0x13   :  { %v34_v2 = vld [vmem:[#allocation3] sm:$0xff]  ;;  %v91_v3 = vadd.f32 %v51_v1, %v50_v0  ;;  %v35_v4 = vld [vmem:[#allocation3 + $0x8] sm:$0xff]  ;;  %v52_v5 = vld [vmem:[#allocation3 + $0x90] sm:$0xff]  ;;  %33 = vst.msk [vmem:[#allocation2] sm:$0x3] %vm32_vm0, %v583_v50  ;;  %529 = vmatprep.subr.mxu1 %v583_v50  ;;  %v584_v52 = vmov 0.0|0.0  }
  0x14   :  { %v53_v6 = vld [vmem:[#allocation3 + $0x98] sm:$0xff]  ;;  %v67_v7 = vadd.f32 %v35_v4, %v34_v2  ;;  %v36_v8 = vld [vmem:[#allocation3 + $0x10] sm:$0xff]  ;;  %v54_v12 = vld [vmem:[#allocation3 + $0xa0] sm:$0xff]  ;;  %534 = vmatprep.subr.bf16.mxu0 %v584_v52  ;;  %vm585_vm1 = vmmov 0   ;;  %v131_v2 = vlaneseq  ;;  %vm142_vm2 = vcmask 130112  }
  0x15   :  { %v37_v9 = vld [vmem:[#allocation3 + $0x18] sm:$0xff]  ;;  %92 = vadd.xlane.f32.xlu1 %v91_v3  ;;  %v94_v10 = vadd.f32 %v53_v6, %v52_v5  ;;  %v55_v13 = vld [vmem:[#allocation3 + $0xa8] sm:$0xff]  ;;  %v38_v14 = vld [vmem:[#allocation3 + $0x20] sm:$0xff]  ;;  %526 = vmatprep.mubr.msk.f32.mxu0 %vm585_vm1, %v583_v50  ;;  %vm149_vm3 = vcmask 195712   ;;  %vm156_vm4 = vcmask 261312   ;;  %vm163_vm5 = vcmask 326912  }
  0x16   :  { %68 = vadd.xlane.f32.xlu0 %v67_v7  ;;  %v70_v11 = vadd.f32 %v37_v9, %v36_v8  ;;  %v39_v15 = vld [vmem:[#allocation3 + $0x28] sm:$0xff]  ;;  %v97_v16 = vadd.f32 %v55_v13, %v54_v12  ;;  %v56_v18 = vld [vmem:[#allocation3 + $0xb0] sm:$0xff]  ;;  %v57_v19 = vld [vmem:[#allocation3 + $0xb8] sm:$0xff]  ;;  %531 = vmatprep.mubr.msk.f32.mxu1 %vm585_vm1, %v583_v50  ;;  %v132_v5 = vand.u32 127, %v131_v2  ;;  %vm170_vm6 = vcmask 392512  }
  0x17   :  { %v73_v17 = vadd.f32 %v39_v15, %v38_v14  ;;  %v40_v20 = vld [vmem:[#allocation3 + $0x30] sm:$0xff]  ;;  %v41_v21 = vld [vmem:[#allocation3 + $0x38] sm:$0xff]  ;;  %v100_v22 = vadd.f32 %v57_v19, %v56_v18  ;;  %v58_v24 = vld [vmem:[#allocation3 + $0xc0] sm:$0xff]  ;;  %vm177_vm7 = vcmask 458112   ;;  %vm184_vm8 = vcmask 523712  }
  0x18   :  { %v76_v23 = vadd.f32 %v41_v21, %v40_v20  ;;  %v59_v25 = vld [vmem:[#allocation3 + $0xc8] sm:$0xff]  ;;  %v42_v26 = vld [vmem:[#allocation3 + $0x40] sm:$0xff]  ;;  %v60_v30 = vld [vmem:[#allocation3 + $0xd0] sm:$0xff]  ;;  %v137_v7 = vadd.s32 4294967288, %v132_v5  ;;  %v144_v9 = vadd.s32 4294967280, %v132_v5  ;;  %v158_v12 = vadd.s32 4294967264, %v132_v5 }
  0x19   :  { %95 = vadd.xlane.f32.xlu1 %v94_v10  ;;  %v43_v27 = vld [vmem:[#allocation3 + $0x48] sm:$0xff]  ;;  %v103_v28 = vadd.f32 %v59_v25, %v58_v24  ;;  %v61_v31 = vld [vmem:[#allocation3 + $0xd8] sm:$0xff]  ;;  %v44_v32 = vld [vmem:[#allocation3 + $0x50] sm:$0xff]  ;;  %v643_v10 = vshrl.u32 %v131_v2, 7  ;;  %v172_v18 = vadd.s32 4294967248, %v132_v5  ;;  %vm225_vm9 = vcmask 1041409  }
  0x1a   :  { %71 = vadd.xlane.f32.xlu0 %v70_v11  ;;  %v79_v29 = vadd.f32 %v43_v27, %v42_v26  ;;  %v45_v33 = vld [vmem:[#allocation3 + $0x58] sm:$0xff]  ;;  %v106_v34 = vadd.f32 %v61_v31, %v60_v30  ;;  %v62_v36 = vld [vmem:[#allocation3 + $0xe0] sm:$0xff]  ;;  %v63_v37 = vld [vmem:[#allocation3 + $0xe8] sm:$0xff]  ;;  %v151_v11 = vadd.s32 4294967272, %v132_v5  ;;  %v179_v26 = vadd.s32 4294967240, %v132_v5 }
  0x1b   :  { %v82_v35 = vadd.f32 %v45_v33, %v44_v32  ;;  %v46_v38 = vld [vmem:[#allocation3 + $0x60] sm:$0xff]  ;;  %v47_v39 = vld [vmem:[#allocation3 + $0x68] sm:$0xff]  ;;  %v109_v40 = vadd.f32 %v63_v37, %v62_v36  ;;  %v64_v42 = vld [vmem:[#allocation3 + $0xf0] sm:$0xff]  ;;  %v140_v14 = vsub.s32 %v137_v7, %v643_v10  ;;  %v135_v19 = vsub.s32 %v132_v5, %v643_v10 }
  0x1c   :  { %v85_v41 = vadd.f32 %v47_v39, %v46_v38  ;;  %v65_v43 = vld [vmem:[#allocation3 + $0xf8] sm:$0xff]  ;;  %v48_v44 = vld [vmem:[#allocation3 + $0x70] sm:$0xff]  ;;  %v236_v49 = vld [vmem:[%s734_s1 + $0x8] sm:$0xff]  ;;  %v154_v20 = vsub.s32 %v151_v11, %v643_v10  ;;  %v161_v21 = vsub.s32 %v158_v12, %v643_v10  ;;  %vm243_vm10 = vcmask 523264  }
  0x1d   :  { %98 = vadd.xlane.f32.xlu1 %v97_v16  ;;  %v49_v45 = vld [vmem:[#allocation3 + $0x78] sm:$0xff]  ;;  %v112_v46 = vadd.f32 %v65_v43, %v64_v42  ;;  %v237_v53 = vld [vmem:[%s734_s1 + $0x10] sm:$0xff]  ;;  %v240_v57 = vld [vmem:[%s734_s1 + $0x28] sm:$0xff]  ;;  %v165_v16 = vadd.s32 4294967256, %v132_v5  ;;  %vm323_vm11 = vcmask 1043456   ;;  %vm319_vm12 = vcmask 31744  }
  0x1e   :  { %74 = vadd.xlane.f32.xlu0 %v73_v17  ;;  %v88_v47 = vadd.f32 %v49_v45, %v48_v44  ;;  %v235_v48 = vld [vmem:[%s734_s1] sm:$0xff]  ;;  %v238_v54 = vld [vmem:[%s734_s1 + $0x18] sm:$0xff]  ;;  %v241_v59 = vld [vmem:[%s734_s1 + $0x30] sm:$0xff]  ;;  %v147_v17 = vsub.s32 %v144_v9, %v643_v10  ;;  %v405_v12 = vsub.s32 0, %v643_v10  ;;  %vm473_vm13 = vcmask 7168  }
  0x1f   :  { %v535_v51 = vpack.c.bf16 %v236_v49, %v235_v48  ;;  %v538_v55 = vpack.c.bf16 %v238_v54, %v237_v53  ;;  %v239_v56 = vld [vmem:[%s734_s1 + $0x20] sm:$0xff]  ;;  %v242_v60 = vld [vmem:[%s734_s1 + $0x38] sm:$0xff]  ;;  %v168_v24 = vsub.s32 %v165_v16, %v643_v10 }
  0x20   :  { %v541_v58 = vpack.c.bf16 %v240_v57, %v239_v56  ;;  %v544_v61 = vpack.c.bf16 %v242_v60, %v241_v59  ;;  %v318_v2 = vld [vmem:[%s735_s2] sm:$0xf] }
  0x21   :  { %101 = vadd.xlane.f32.xlu1 %v100_v22  ;;  %536 = vmatpush3.bf16.msra.mxu0 %v535_v51 }
  0x22   :  { %77 = vadd.xlane.f32.xlu0 %v76_v23  ;;  %537 = vmatprep.subr.bf16.mxu0 %v584_v52 }
  0x23   :  { %530 = vmatpush3.msk.msra.mxu1 %vm323_vm11, %v318_v2 }
  0x25   :  { %104 = vadd.xlane.f32.xlu1 %v103_v28  ;;  %539 = vmatpush3.bf16.msra.mxu0 %v538_v55 }
  0x26   :  { %80 = vadd.xlane.f32.xlu0 %v79_v29  ;;  %540 = vmatprep.subr.bf16.mxu0 %v584_v52  ;;  %v175_v29 = vsub.s32 %v172_v18, %v643_v10 }
  0x29   :  { %107 = vadd.xlane.f32.xlu1 %v106_v34  ;;  %542 = vmatpush3.bf16.msra.mxu0 %v541_v58 }
  0x2a   :  { %83 = vadd.xlane.f32.xlu0 %v82_v35  ;;  %543 = vmatprep.subr.bf16.mxu0 %v584_v52 }
  0x2d   :  { %110 = vadd.xlane.f32.xlu1 %v109_v40  ;;  %545 = vmatpush3.bf16.msra.mxu0 %v544_v61  ;;  %v66_v61 = vld [vmem:[#allocation2] sm:$0x3] }
  0x2e   :  { %86 = vadd.xlane.f32.xlu0 %v85_v41  ;;  %v182_v41 = vsub.s32 %v179_v26, %v643_v10 }
  0x31   :  { %113 = vadd.xlane.f32.xlu1 %v112_v46 }
  0x32   :  { %89 = vadd.xlane.f32.xlu0 %v88_v47 }
  0xa2   :  { %v93_v62 = vpop.xlane.xlu1 %92 }
  0xa3   :  { %v69_v63 = vpop.xlane.xlu0 %68  ;;  %v189_v30 = vrot.slane %v93_v62, %v135_v19 }
  0xa4   :  { %v136_v33 = vrot.slane %v69_v63, %v135_v19 }
  0xa6   :  { %v96_v0 = vpop.xlane.xlu1 %95 }
  0xa7   :  { %v72_v1 = vpop.xlane.xlu0 %71  ;;  %v193_v23 = vrot.slane %v96_v0, %v140_v14 }
  0xa8   :  { %v141_v27 = vrot.slane %v72_v1, %v140_v14 }
  0xa9   :  { %v194_v37 = vsel %vm142_vm2, %v193_v23, %v189_v30 }
  0xaa   :  { %v99_v3 = vpop.xlane.xlu1 %98  ;;  %v143_v42 = vsel %vm142_vm2, %v141_v27, %v136_v33 }
  0xab   :  { %v75_v4 = vpop.xlane.xlu0 %74  ;;  %v198_v28 = vrot.slane %v99_v3, %v147_v17 }
  0xac   :  { %v148_v31 = vrot.slane %v75_v4, %v147_v17 }
  0xad   :  { %v199_v43 = vsel %vm149_vm3, %v198_v28, %v194_v37 }
  0xae   :  { %v102_v6 = vpop.xlane.xlu1 %101  ;;  %v150_v46 = vsel %vm149_vm3, %v148_v31, %v143_v42 }
  0xaf   :  { %v78_v8 = vpop.xlane.xlu0 %77  ;;  %v203_v32 = vrot.slane %v102_v6, %v154_v20 }
  0xb0   :  { %v155_v34 = vrot.slane %v78_v8, %v154_v20 }
  0xb1   :  { %v204_v47 = vsel %vm156_vm4, %v203_v32, %v199_v43 }
  0xb2   :  { %v105_v13 = vpop.xlane.xlu1 %104  ;;  %v157_v49 = vsel %vm156_vm4, %v155_v34, %v150_v46 }
  0xb3   :  { %v81_v15 = vpop.xlane.xlu0 %80  ;;  %v208_v35 = vrot.slane %v105_v13, %v161_v21 }
  0xb4   :  { %v162_v38 = vrot.slane %v81_v15, %v161_v21  ;;  %v440_v15 = vsub.s32 1, %v643_v10 }
  0xb5   :  { %v209_v50 = vsel %vm163_vm5, %v208_v35, %v204_v47 }
  0xb6   :  { %v108_v22 = vpop.xlane.xlu1 %107  ;;  %v164_v52 = vsel %vm163_vm5, %v162_v38, %v157_v49 }
  0xb7   :  { %v84_v25 = vpop.xlane.xlu0 %83  ;;  %v213_v39 = vrot.slane %v108_v22, %v168_v24 }
  0xb8   :  { %v169_v44 = vrot.slane %v84_v25, %v168_v24 }
  0xb9   :  { %v214_v53 = vsel %vm170_vm6, %v213_v39, %v209_v50 }
  0xba   :  { %v111_v36 = vpop.xlane.xlu1 %110  ;;  %v171_v56 = vsel %vm170_vm6, %v169_v44, %v164_v52 }
  0xbb   :  { %v87_v40 = vpop.xlane.xlu0 %86  ;;  %v218_v45 = vrot.slane %v111_v36, %v175_v29 }
  0xbc   :  { %v176_v48 = vrot.slane %v87_v40, %v175_v29 }
  0xbd   :  { %v219_v57 = vsel %vm177_vm7, %v218_v45, %v214_v53 }
  0xbe   :  { %v114_v51 = vpop.xlane.xlu1 %113  ;;  %v178_v59 = vsel %vm177_vm7, %v176_v48, %v171_v56 }
  0xbf   :  { %v223_v54 = vrot.slane %v114_v51, %v182_v41  ;;  %v90_v55 = vpop.xlane.xlu0 %89 }
  0xc0   :  { %v183_v58 = vrot.slane %v90_v55, %v182_v41 }
  0xc1   :  { %v224_v60 = vsel %vm184_vm8, %v223_v54, %v219_v57 }
  0xc2   :  { %v185_v62 = vsel %vm184_vm8, %v183_v58, %v178_v59 }
  0xc3   :  { %v226_v63 = vsel %vm225_vm9, %v224_v60, %v185_v62 }
  0xc4   :  { %v228_v0 = vadd.f32 %v226_v63, %v66_v61 }
  0xc6   :  { %230 = vst.msk [vmem:[#allocation2] sm:$0x3] %vm32_vm0, %v228_v0 }
  0xcd   :  { %v234_v1 = vld [vmem:[#allocation2] sm:$0x3] }
  0xce   :  { %527 = vmatmul.mubr.msk.f32.vlgmr.msra.gmra.mrb[0].mxu0 %vm243_vm10, %v234_v1 }
 0x1a1   :  { %v313_v3 = vpop.f32.mrb[0].mxu0 }
 0x1a2   :  { %v317_v4 = vmax.f32 %v313_v3, 0.0  ;;  %v528_v5 = vpop.f32.mrb[1].mxu0 }
 0x1a4   :  { %532 = vmatmul.mubr.msk.f32.vlgmr.msra.gmra.mrb[0].mxu1 %vm319_vm12, %v317_v4 }
 0x277   :  { %v393_v6 = vpop.f32.mrb[0].mxu1 }
 0x278   :  { %v498_v7 = vmul.f32 -1.442695, %v393_v6  ;;  %v533_v8 = vpop.f32.mrb[1].mxu1 }
 0x27a   :  { %552 = vpow2.f32 %v498_v7 }
 0x284   :  { %v553_v9 = vpop.eup %552 }
 0x285   :  { %v400_v11 = vadd.f32 1.0, %v553_v9 }
 0x287   :  { %554 = vrcp.f32 %v400_v11 }
 0x291   :  { %v555_v13 = vpop.eup %554 }
 0x292   :  { %v406_v14 = vrot.slane %v555_v13, %v405_v12  ;;  %v441_v16 = vrot.slane %v555_v13, %v440_v15 }
 0x294   :  { %412 = vbcast.lane.b32.xlu1 %v406_v14, 264  ;;  %408 = vbcast.lane.b32.xlu0 %v406_v14, 256 }
 0x298   :  { %416 = vbcast.lane.b32.xlu1 %v406_v14, 272  ;;  %424 = vbcast.lane.b32.xlu0 %v406_v14, 288 }
 0x29c   :  { %420 = vbcast.lane.b32.xlu1 %v406_v14, 280  ;;  %432 = vbcast.lane.b32.xlu0 %v406_v14, 304 }
 0x2a0   :  { %428 = vbcast.lane.b32.xlu1 %v406_v14, 296  ;;  %443 = vbcast.lane.b32.xlu0 %v441_v16, 256 }
 0x2a4   :  { %436 = vbcast.lane.b32.xlu1 %v406_v14, 312  ;;  %451 = vbcast.lane.b32.xlu0 %v441_v16, 272 }
 0x2a8   :  { %447 = vbcast.lane.b32.xlu1 %v441_v16, 264  ;;  %459 = vbcast.lane.b32.xlu0 %v441_v16, 288 }
 0x2ac   :  { %455 = vbcast.lane.b32.xlu1 %v441_v16, 280  ;;  %467 = vbcast.lane.b32.xlu0 %v441_v16, 304 }
 0x2b0   :  { %463 = vbcast.lane.b32.xlu1 %v441_v16, 296 }
 0x2b4   :  { %471 = vbcast.lane.b32.xlu1 %v441_v16, 312 }
 0x306   :  { %v413_v17 = vpop.permute.xlu1 %412  ;;  %v409_v18 = vpop.permute.xlu0 %408 }
 0x307   :  { %475 = vst.msk [vmem:[%s736_s3 + $0x8] sm:$0xff] %vm473_vm13, %v413_v17  ;;  %474 = vst.msk [vmem:[%s736_s3] sm:$0xff] %vm473_vm13, %v409_v18 }
 0x30a   :  { %v417_v10 = vpop.permute.xlu1 %416  ;;  %v425_v19 = vpop.permute.xlu0 %424 }
 0x30b   :  { %476 = vst.msk [vmem:[%s736_s3 + $0x10] sm:$0xff] %vm473_vm13, %v417_v10  ;;  %478 = vst.msk [vmem:[%s736_s3 + $0x20] sm:$0xff] %vm473_vm13, %v425_v19 }
 0x30e   :  { %v421_v20 = vpop.permute.xlu1 %420  ;;  %v433_v21 = vpop.permute.xlu0 %432 }
 0x30f   :  { %477 = vst.msk [vmem:[%s736_s3 + $0x18] sm:$0xff] %vm473_vm13, %v421_v20  ;;  %480 = vst.msk [vmem:[%s736_s3 + $0x30] sm:$0xff] %vm473_vm13, %v433_v21 }
 0x312   :  { %v429_v22 = vpop.permute.xlu1 %428  ;;  %v444_v23 = vpop.permute.xlu0 %443 }
 0x313   :  { %479 = vst.msk [vmem:[%s736_s3 + $0x28] sm:$0xff] %vm473_vm13, %v429_v22  ;;  %482 = vst.msk [vmem:[%s736_s3 + $0x40] sm:$0xff] %vm473_vm13, %v444_v23 }
 0x316   :  { %v437_v24 = vpop.permute.xlu1 %436  ;;  %v452_v25 = vpop.permute.xlu0 %451 }
 0x317   :  { %481 = vst.msk [vmem:[%s736_s3 + $0x38] sm:$0xff] %vm473_vm13, %v437_v24  ;;  %484 = vst.msk [vmem:[%s736_s3 + $0x50] sm:$0xff] %vm473_vm13, %v452_v25 }
 0x31a   :  { %v448_v26 = vpop.permute.xlu1 %447  ;;  %v460_v27 = vpop.permute.xlu0 %459 }
 0x31b   :  { %483 = vst.msk [vmem:[%s736_s3 + $0x48] sm:$0xff] %vm473_vm13, %v448_v26  ;;  %486 = vst.msk [vmem:[%s736_s3 + $0x60] sm:$0xff] %vm473_vm13, %v460_v27 }
 0x31e   :  { %v456_v28 = vpop.permute.xlu1 %455  ;;  %v468_v29 = vpop.permute.xlu0 %467 }
 0x31f   :  { %485 = vst.msk [vmem:[%s736_s3 + $0x58] sm:$0xff] %vm473_vm13, %v456_v28  ;;  %488 = vst.msk [vmem:[%s736_s3 + $0x70] sm:$0xff] %vm473_vm13, %v468_v29 }
 0x322   :  { %v464_v30 = vpop.permute.xlu1 %463 }
 0x323   :  { %487 = vst.msk [vmem:[%s736_s3 + $0x68] sm:$0xff] %vm473_vm13, %v464_v30 }
 0x326   :  { %v472_v31 = vpop.permute.xlu1 %471 }
 0x327   :  { %489 = vst.msk [vmem:[%s736_s3 + $0x78] sm:$0xff] %vm473_vm13, %v472_v31 }
 0x328   :  { %494 = vsyncpa [#allocation4], 1 }

</bundles_post_ra>
